<compile_context>
chip_gen: v5e
topology: v5e:2x2
jax: 0.10.0
libtpu: 0.0.40
codegen_flags: <defaults>
</compile_context>

<pallas_src>
import jax
import jax.numpy as jnp
from jax.experimental import pallas as pl
from jax.experimental.pallas import tpu as pltpu

LANES = 128


def _make_kernel(c_in, t_groups, g_groups, ragged, rows_pad):
    num_pairs = c_in * (c_in + 1) // 2
    num_rows = num_pairs + c_in

    def kernel(x_ref, o_ref):
        # x_ref block: (1, C_in, T, 128);  o_ref block: (1, 1, rows_pad, 128)
        x = x_ref[0].astype(jnp.float32)                      # (C_in, T, 128)

        if ragged:
            # Only whole trailing 128-lane groups of the last block can be
            # garbage (HW was padded to a multiple of 128 in the wrapper).
            # Select-based mask applied ONCE -> garbage/NaN lanes discarded.
            j = pl.program_id(1)
            grp = jax.lax.broadcasted_iota(jnp.int32, (1, t_groups, LANES), 1)
            x = jnp.where((j * t_groups + grp) < g_groups, x, 0.0)

        rows = []
        # Pairwise-product partial sums (upper triangle), lanes kept.
        for ci in range(c_in):
            xi = x[ci]                                        # (T, 128) slab
            for cj in range(ci, c_in):
                rows.append(jnp.sum(xi * x[cj], axis=0, keepdims=True))
        # Per-channel partial sums.
        for ci in range(c_in):
            rows.append(jnp.sum(x[ci], axis=0, keepdims=True))

        if rows_pad > num_rows:
            rows.append(jnp.zeros((rows_pad - num_rows, LANES), jnp.float32))

        o_ref[0, 0] = jnp.concatenate(rows, axis=0)           # (rows_pad, 128)

    return kernel


def projection_v4(x_nchw, w, b, *, target_block_bytes=2 * 1024 * 1024):
    """x_nchw: (N, C_in, H, W)
       w:      (C_out, C_in)   Conv2d 1x1 weight with the (1,1) kernel dims squeezed
       b:      (C_out,)        Conv2d bias
       returns scalar ||conv(x)||_2 (Frobenius norm over all elements)
    """
    N, C_in, H, W = x_nchw.shape
    HW = H * W

    # ---- repack pixels into full (sublane, lane) tiles: (N, C_in, G, 128) ----
    x3 = x_nchw.reshape(N, C_in, HW)
    rem = HW % LANES
    if rem:
        # Zero padding: zeros contribute nothing to Gram / channel sums.
        x3 = jnp.pad(x3, ((0, 0), (0, 0), (0, LANES - rem)))
    g_groups = x3.shape[2] // LANES
    x4 = x3.reshape(N, C_in, g_groups, LANES)

    # ---- tile sizing: ~2 MB of input per grid step, T multiple of 8 ----
    itemsize = jnp.dtype(x_nchw.dtype).itemsize
    bytes_per_group = C_in * LANES * itemsize
    max_groups = max(8, (target_block_bytes // bytes_per_group) // 8 * 8)
    t_groups = g_groups if g_groups <= max_groups else max_groups
    nbj = pl.cdiv(g_groups, t_groups)
    ragged = (g_groups % t_groups) != 0

    num_pairs = C_in * (C_in + 1) // 2
    num_rows = num_pairs + C_in
    rows_pad = ((num_rows + 7) // 8) * 8                      # (8,128)-friendly

    kernel = _make_kernel(C_in, t_groups, g_groups, ragged, rows_pad)

    parts = pl.pallas_call(
        kernel,
        out_shape=jax.ShapeDtypeStruct((N, nbj, rows_pad, LANES), jnp.float32),
        grid=(N, nbj),
        in_specs=[
            pl.BlockSpec((1, C_in, t_groups, LANES), lambda n, j: (n, 0, j, 0)),
        ],
        out_specs=pl.BlockSpec((1, 1, rows_pad, LANES), lambda n, j: (n, j, 0, 0)),
        compiler_params=pltpu.CompilerParams(
            # Disjoint per-block outputs, no resident state -> fully parallel
            # grid (both TensorCores usable on v7x).
            dimension_semantics=("parallel", "parallel"),
        ),
    )(x4)

    # ---- tiny wrapper-side reduction + quadratic-form combine ----
    totals = jnp.sum(parts, axis=(0, 1, 3))                   # (rows_pad,)
    pair_sums = totals[:num_pairs]
    chan_sums = totals[num_pairs:num_rows]

    wf = w.astype(jnp.float32)
    bf = b.astype(jnp.float32)
    gram_w = wf.T @ wf                                        # (C_in, C_in)
    c_vec = wf.T @ bf                                         # (C_in,)

    ssq = jnp.float32(0.0)
    idx = 0
    for ci in range(C_in):
        for cj in range(ci, C_in):
            factor = 1.0 if ci == cj else 2.0
            ssq = ssq + factor * gram_w[ci, cj] * pair_sums[idx]
            idx += 1
    ssq = ssq + 2.0 * jnp.dot(c_vec, chan_sums)
    ssq = ssq + jnp.float32(N * HW) * jnp.dot(bf, bf)         # true pixel count
    return jnp.sqrt(ssq)


def _reference(x_nchw, w, b):
    """Plain-JAX reference of the PyTorch forward: 1x1 conv + Frobenius norm."""
    o = jnp.einsum("nchw,oc->nohw", x_nchw, w) + b[None, :, None, None]
    return jnp.sqrt(jnp.sum(o * o))


if __name__ == "__main__":
    base_channels = 4
    proj_dim = 8
    N, H, W = 2, 16, 16

    key = jax.random.PRNGKey(0)
    k_x, k_w, k_b = jax.random.split(key, 3)

    x = jax.random.normal(k_x, (N, base_channels, H, W), dtype=jnp.float32)
    bound = 1.0 / (base_channels ** 0.5)
    w = jax.random.uniform(k_w, (proj_dim, base_channels),
                           minval=-bound, maxval=bound, dtype=jnp.float32)
    b = jax.random.uniform(k_b, (proj_dim,),
                           minval=-bound, maxval=bound, dtype=jnp.float32)

    out = projection_v4(x, w, b)
    out = jax.block_until_ready(out)

    ref = _reference(x, w, b)
    assert out.shape == (), out.shape
    assert jnp.allclose(out, ref, rtol=1e-4, atol=1e-4), (out, ref)

    print("KERNEL_OK")
</pallas_src>

<mosaic_0001>
module attributes {stable_mosaic.version = 11 : i64} {
  func.func @kernel(%arg0: i32, %arg1: i32, %arg2: memref<1x4x2x128xf32, #tpu.memory_space<vmem>>, %arg3: memref<1x1x16x128xf32, #tpu.memory_space<vmem>>) attributes {dimension_semantics = [#tpu.dimension_semantics<parallel>, #tpu.dimension_semantics<parallel>], iteration_bounds = array<i64: 2, 1>, scalar_prefetch = 0 : i64, scratch_operands = 0 : i64, tpu.core_type = #tpu.core_type<tc>, window_params = [{transform_indices = @transform_0, window_bounds = array<i64: 1, 4, 2, 128>}, {transform_indices = @transform_1, window_bounds = array<i64: 1, 1, 16, 128>}]} {
    %c0 = arith.constant 0 : index
    %c0_0 = arith.constant 0 : index
    %c0_1 = arith.constant 0 : index
    %c0_2 = arith.constant 0 : index
    %0 = vector.load %arg2[%c0, %c0_0, %c0_1, %c0_2] : memref<1x4x2x128xf32, #tpu.memory_space<vmem>>, vector<1x4x2x128xf32>
    %1 = vector.shape_cast %0 : vector<1x4x2x128xf32> to vector<4x2x128xf32>
    %2 = vector.extract_strided_slice %1 {offsets = [0, 0, 0], sizes = [1, 2, 128], strides = [1, 1, 1]} : vector<4x2x128xf32> to vector<1x2x128xf32>
    %3 = vector.shape_cast %2 : vector<1x2x128xf32> to vector<2x128xf32>
    %4 = vector.extract_strided_slice %1 {offsets = [0, 0, 0], sizes = [1, 2, 128], strides = [1, 1, 1]} : vector<4x2x128xf32> to vector<1x2x128xf32>
    %5 = vector.shape_cast %4 : vector<1x2x128xf32> to vector<2x128xf32>
    %6 = arith.mulf %3, %5 : vector<2x128xf32>
    %cst = arith.constant dense<0.000000e+00> : vector<128xf32>
    %7 = vector.multi_reduction <add>, %6, %cst [0] : vector<2x128xf32> to vector<128xf32>
    %8 = vector.shape_cast %7 : vector<128xf32> to vector<1x128xf32>
    %9 = vector.extract_strided_slice %1 {offsets = [1, 0, 0], sizes = [1, 2, 128], strides = [1, 1, 1]} : vector<4x2x128xf32> to vector<1x2x128xf32>
    %10 = vector.shape_cast %9 : vector<1x2x128xf32> to vector<2x128xf32>
    %11 = arith.mulf %3, %10 : vector<2x128xf32>
    %cst_3 = arith.constant dense<0.000000e+00> : vector<128xf32>
    %12 = vector.multi_reduction <add>, %11, %cst_3 [0] : vector<2x128xf32> to vector<128xf32>
    %13 = vector.shape_cast %12 : vector<128xf32> to vector<1x128xf32>
    %14 = vector.extract_strided_slice %1 {offsets = [2, 0, 0], sizes = [1, 2, 128], strides = [1, 1, 1]} : vector<4x2x128xf32> to vector<1x2x128xf32>
    %15 = vector.shape_cast %14 : vector<1x2x128xf32> to vector<2x128xf32>
    %16 = arith.mulf %3, %15 : vector<2x128xf32>
    %cst_4 = arith.constant dense<0.000000e+00> : vector<128xf32>
    %17 = vector.multi_reduction <add>, %16, %cst_4 [0] : vector<2x128xf32> to vector<128xf32>
    %18 = vector.shape_cast %17 : vector<128xf32> to vector<1x128xf32>
    %19 = vector.extract_strided_slice %1 {offsets = [3, 0, 0], sizes = [1, 2, 128], strides = [1, 1, 1]} : vector<4x2x128xf32> to vector<1x2x128xf32>
    %20 = vector.shape_cast %19 : vector<1x2x128xf32> to vector<2x128xf32>
    %21 = arith.mulf %3, %20 : vector<2x128xf32>
    %cst_5 = arith.constant dense<0.000000e+00> : vector<128xf32>
    %22 = vector.multi_reduction <add>, %21, %cst_5 [0] : vector<2x128xf32> to vector<128xf32>
    %23 = vector.shape_cast %22 : vector<128xf32> to vector<1x128xf32>
    %24 = vector.extract_strided_slice %1 {offsets = [1, 0, 0], sizes = [1, 2, 128], strides = [1, 1, 1]} : vector<4x2x128xf32> to vector<1x2x128xf32>
    %25 = vector.shape_cast %24 : vector<1x2x128xf32> to vector<2x128xf32>
    %26 = vector.extract_strided_slice %1 {offsets = [1, 0, 0], sizes = [1, 2, 128], strides = [1, 1, 1]} : vector<4x2x128xf32> to vector<1x2x128xf32>
    %27 = vector.shape_cast %26 : vector<1x2x128xf32> to vector<2x128xf32>
    %28 = arith.mulf %25, %27 : vector<2x128xf32>
    %cst_6 = arith.constant dense<0.000000e+00> : vector<128xf32>
    %29 = vector.multi_reduction <add>, %28, %cst_6 [0] : vector<2x128xf32> to vector<128xf32>
    %30 = vector.shape_cast %29 : vector<128xf32> to vector<1x128xf32>
    %31 = vector.extract_strided_slice %1 {offsets = [2, 0, 0], sizes = [1, 2, 128], strides = [1, 1, 1]} : vector<4x2x128xf32> to vector<1x2x128xf32>
    %32 = vector.shape_cast %31 : vector<1x2x128xf32> to vector<2x128xf32>
    %33 = arith.mulf %25, %32 : vector<2x128xf32>
    %cst_7 = arith.constant dense<0.000000e+00> : vector<128xf32>
    %34 = vector.multi_reduction <add>, %33, %cst_7 [0] : vector<2x128xf32> to vector<128xf32>
    %35 = vector.shape_cast %34 : vector<128xf32> to vector<1x128xf32>
    %36 = vector.extract_strided_slice %1 {offsets = [3, 0, 0], sizes = [1, 2, 128], strides = [1, 1, 1]} : vector<4x2x128xf32> to vector<1x2x128xf32>
    %37 = vector.shape_cast %36 : vector<1x2x128xf32> to vector<2x128xf32>
    %38 = arith.mulf %25, %37 : vector<2x128xf32>
    %cst_8 = arith.constant dense<0.000000e+00> : vector<128xf32>
    %39 = vector.multi_reduction <add>, %38, %cst_8 [0] : vector<2x128xf32> to vector<128xf32>
    %40 = vector.shape_cast %39 : vector<128xf32> to vector<1x128xf32>
    %41 = vector.extract_strided_slice %1 {offsets = [2, 0, 0], sizes = [1, 2, 128], strides = [1, 1, 1]} : vector<4x2x128xf32> to vector<1x2x128xf32>
    %42 = vector.shape_cast %41 : vector<1x2x128xf32> to vector<2x128xf32>
    %43 = vector.extract_strided_slice %1 {offsets = [2, 0, 0], sizes = [1, 2, 128], strides = [1, 1, 1]} : vector<4x2x128xf32> to vector<1x2x128xf32>
    %44 = vector.shape_cast %43 : vector<1x2x128xf32> to vector<2x128xf32>
    %45 = arith.mulf %42, %44 : vector<2x128xf32>
    %cst_9 = arith.constant dense<0.000000e+00> : vector<128xf32>
    %46 = vector.multi_reduction <add>, %45, %cst_9 [0] : vector<2x128xf32> to vector<128xf32>
    %47 = vector.shape_cast %46 : vector<128xf32> to vector<1x128xf32>
    %48 = vector.extract_strided_slice %1 {offsets = [3, 0, 0], sizes = [1, 2, 128], strides = [1, 1, 1]} : vector<4x2x128xf32> to vector<1x2x128xf32>
    %49 = vector.shape_cast %48 : vector<1x2x128xf32> to vector<2x128xf32>
    %50 = arith.mulf %42, %49 : vector<2x128xf32>
    %cst_10 = arith.constant dense<0.000000e+00> : vector<128xf32>
    %51 = vector.multi_reduction <add>, %50, %cst_10 [0] : vector<2x128xf32> to vector<128xf32>
    %52 = vector.shape_cast %51 : vector<128xf32> to vector<1x128xf32>
    %53 = vector.extract_strided_slice %1 {offsets = [3, 0, 0], sizes = [1, 2, 128], strides = [1, 1, 1]} : vector<4x2x128xf32> to vector<1x2x128xf32>
    %54 = vector.shape_cast %53 : vector<1x2x128xf32> to vector<2x128xf32>
    %55 = vector.extract_strided_slice %1 {offsets = [3, 0, 0], sizes = [1, 2, 128], strides = [1, 1, 1]} : vector<4x2x128xf32> to vector<1x2x128xf32>
    %56 = vector.shape_cast %55 : vector<1x2x128xf32> to vector<2x128xf32>
    %57 = arith.mulf %54, %56 : vector<2x128xf32>
    %cst_11 = arith.constant dense<0.000000e+00> : vector<128xf32>
    %58 = vector.multi_reduction <add>, %57, %cst_11 [0] : vector<2x128xf32> to vector<128xf32>
    %59 = vector.shape_cast %58 : vector<128xf32> to vector<1x128xf32>
    %60 = vector.extract_strided_slice %1 {offsets = [0, 0, 0], sizes = [1, 2, 128], strides = [1, 1, 1]} : vector<4x2x128xf32> to vector<1x2x128xf32>
    %61 = vector.shape_cast %60 : vector<1x2x128xf32> to vector<2x128xf32>
    %cst_12 = arith.constant dense<0.000000e+00> : vector<128xf32>
    %62 = vector.multi_reduction <add>, %61, %cst_12 [0] : vector<2x128xf32> to vector<128xf32>
    %63 = vector.shape_cast %62 : vector<128xf32> to vector<1x128xf32>
    %64 = vector.extract_strided_slice %1 {offsets = [1, 0, 0], sizes = [1, 2, 128], strides = [1, 1, 1]} : vector<4x2x128xf32> to vector<1x2x128xf32>
    %65 = vector.shape_cast %64 : vector<1x2x128xf32> to vector<2x128xf32>
    %cst_13 = arith.constant dense<0.000000e+00> : vector<128xf32>
    %66 = vector.multi_reduction <add>, %65, %cst_13 [0] : vector<2x128xf32> to vector<128xf32>
    %67 = vector.shape_cast %66 : vector<128xf32> to vector<1x128xf32>
    %68 = vector.extract_strided_slice %1 {offsets = [2, 0, 0], sizes = [1, 2, 128], strides = [1, 1, 1]} : vector<4x2x128xf32> to vector<1x2x128xf32>
    %69 = vector.shape_cast %68 : vector<1x2x128xf32> to vector<2x128xf32>
    %cst_14 = arith.constant dense<0.000000e+00> : vector<128xf32>
    %70 = vector.multi_reduction <add>, %69, %cst_14 [0] : vector<2x128xf32> to vector<128xf32>
    %71 = vector.shape_cast %70 : vector<128xf32> to vector<1x128xf32>
    %72 = vector.extract_strided_slice %1 {offsets = [3, 0, 0], sizes = [1, 2, 128], strides = [1, 1, 1]} : vector<4x2x128xf32> to vector<1x2x128xf32>
    %73 = vector.shape_cast %72 : vector<1x2x128xf32> to vector<2x128xf32>
    %cst_15 = arith.constant dense<0.000000e+00> : vector<128xf32>
    %74 = vector.multi_reduction <add>, %73, %cst_15 [0] : vector<2x128xf32> to vector<128xf32>
    %75 = vector.shape_cast %74 : vector<128xf32> to vector<1x128xf32>
    %cst_16 = arith.constant 0.000000e+00 : f32
    %76 = vector.broadcast %cst_16 : f32 to vector<2x128xf32>
    %77 = tpu.concatenate %8, %13, %18, %23, %30, %35, %40, %47, %52, %59, %63, %67, %71, %75, %76 in 0 : vector<1x128xf32>, vector<1x128xf32>, vector<1x128xf32>, vector<1x128xf32>, vector<1x128xf32>, vector<1x128xf32>, vector<1x128xf32>, vector<1x128xf32>, vector<1x128xf32>, vector<1x128xf32>, vector<1x128xf32>, vector<1x128xf32>, vector<1x128xf32>, vector<1x128xf32>, vector<2x128xf32> -> vector<16x128xf32>
    %c0_17 = arith.constant 0 : index
    %c0_18 = arith.constant 0 : index
    %c0_19 = arith.constant 0 : index
    %c0_20 = arith.constant 0 : index
    %78 = vector.load %arg3[%c0_17, %c0_18, %c0_19, %c0_20] : memref<1x1x16x128xf32, #tpu.memory_space<vmem>>, vector<1x1x16x128xf32>
    %79 = vector.shape_cast %78 : vector<1x1x16x128xf32> to vector<16x128xf32>
    %80 = vector.shape_cast %77 : vector<16x128xf32> to vector<1x1x16x128xf32>
    tpu.vector_store %arg3[%c0_17, %c0_18, %c0_19, %c0_20], %80 {strides = array<i32>} : memref<1x1x16x128xf32, #tpu.memory_space<vmem>>, vector<1x1x16x128xf32>,
    return
  }
  func.func @transform_0(%arg0: i32, %arg1: i32) -> (i32, i32, i32, i32) {
    %c0_i32 = arith.constant 0 : i32
    %c0_i32_0 = arith.constant 0 : i32
    %c0_i32_1 = arith.constant 0 : i32
    return %arg0, %c0_i32, %arg1, %c0_i32_0 : i32, i32, i32, i32
  }
  func.func @transform_1(%arg0: i32, %arg1: i32) -> (i32, i32, i32, i32) {
    %c0_i32 = arith.constant 0 : i32
    %c0_i32_0 = arith.constant 0 : i32
    %c0_i32_1 = arith.constant 0 : i32
    return %arg0, %arg1, %c0_i32, %c0_i32_0 : i32, i32, i32, i32
  }
}

</mosaic_0001>

<bundles_post_ra>
// kernel: tpu_custom_call.1
= control target key start
LH: loop header
LB: loop body
LE: loop exit
PB: predicated region body
PF: predicated region fallthrough
CT: control target
= control target key end

     0   :  { %6 = vsyncpa [#allocation3], 0  ;;  %s788_s0 = inlined_call_operand.hbm [shape: f32[2,4,2,128], index: 0, kind: input, shape index: {}]   ;;  %s789_s1 = inlined_call_operand.hbm [shape: f32[2,1,16,128], index: 1, kind: output, shape index: {}]  }
   0x1   :  { %8 = vsyncpa [#allocation3 + $0x1], 0 }
   0x2   :  { %9 = vsyncpa [#allocation4], 0 }
   0x3   :  { %11 = vsyncpa [#allocation4 + $0x1], 0  ;;  %s603_s6 = smov 0   ;;  %s605_s7 = smov 0  }
   0x4   :  { %s607_s8 = smov 0   ;;  %s609_s9 = smov 0  }
   0x5   :  { %s611_s10 = smov 0   ;;  %s613_s11 = smov 0  }
   0x6 LB: > { %s392_s12 = sadd.s32 4294967295, %s587_s11   ;;  %s393_s13 = sadd.s32 4294967294, %s587_s11   ;;  %s587_s11 = sphi %s613_s11, %s17_s11   ;;  %s583_s10 = sphi %s611_s10, %s798_s10   ;;  %s579_s9 = sphi %s609_s9, %s797_s9   ;;  %s575_s8 = sphi %s607_s8, %s796_s8   ;;  %s571_s7 = sphi %s605_s7, %s795_s7   ;;  %s567_s6 = sphi %s603_s6, %s794_s6  }
   0x7   : > { %s29_s14 = sadd.s32 1, %s583_s10  ;;  %s38_s15 = sadd.s32 1, %s575_s8 }
   0x8   : > { %p31_p0 = scmp.ge.s32.totalorder %s29_s14, 2  ;;  %p45_p1 = scmp.ne.s32.totalorder %s575_s8, %s571_s7 }
   0x9   : > { %p46_p2 = scmp.eq.s32.totalorder %s587_s11, 0  ;;  %p51_p3 = scmp.ne.s32.totalorder %s571_s7, %s567_s6 }
   0xa   : > { %s800_s14 = smov (%p31_p0, %s29_s14), 0  ;;  %p52_p5 = scmp.eq.s32.totalorder %s392_s12, 0 }
   0xb   : > { %p644_p4 = por %p46_p2, %p45_p1  ;;  %s33_s17 = ssub.s32 %s583_s10, %s800_s14 }
   0xc   : > { %p77_p6 = scmp.eq.s32.totalorder %s392_s12, 1  ;;  %p36_p7 = scmp.eq.s32.totalorder %s33_s17, 0 }
   0xd   : > { %p650_p8 = por %p52_p5, %p51_p3  ;;  %p83_p10 = scmp.eq.s32.totalorder %s393_s13, 1 }
   0xe   : > { %p654_p9 = por %p77_p6, %p45_p1  ;;  %p395_p12 = scmp.ge.s32.totalorder %s587_s11, 2 }
   0xf   : > { %s659_s20 = scalar_select %p36_p7, %s575_s8, %s38_s15  }
  0x10   : > { %p661_p11 = por %p83_p10, %p51_p3  ;;  %p421_p13 = scmp.lt.s32.totalorder %s587_s11, 2 }
  0x11   : > { %s103_s22 = sand.u32 1, %s575_s8   ;;  %s407_s24 = sshll.u32 %s583_s10, 3 }
  0x12   : > { %s396_s23 = sshll.u32 %s103_s22, 3  ;;  %s113_s27 = scalar_lea.hbm %s788_s0, %s407_s24 }
  0x13   : > { %s107_s28 = scalar_lea.vmem [#allocation2], %s396_s23  ;;  %s114_s30 = sshll.u32 %s113_s27, 4  ;;  %s115_s30 = int_to_ptr.hbm [resolvable:$true] %s114_s30 }
  0x14   : > { %s116_s29 = sshll.u32 %s107_s28, 4  ;;  %p414_p0 = pnand %p421_p13, %p644_p4  ;;  %s117_s29 = int_to_ptr.vmem [resolvable:$true] %s116_s29 }
  0x15   : > { %p399_p1 = scmp.ge.s32.totalorder %s587_s11, 1  ;;  %s104_s2 = scalar_lea.sflag [#allocation3], %s103_s22 }
  0x16   : > { %s589_s3 = smov 32   ;;  %s590_s4 = smov 2  }
  0x17   : > { %416 = dma.hbm_to_vmem [thread:$0]  (!%p414_p0), %s115_s30, 128, %s117_s29, %s104_s2, %s589_s3, %s589_s3, %s590_s4  }
  0x18   : > { %p124_p2 = scmp.lt.s32.totalorder %s587_s11, 3 }
  0x1a   : > { %p125_p3 = pnand %p399_p1, %p124_p2 }
  0x1b   : > { %s677_s5 = sand.u32 (!%p125_p3), 1, %s571_s7  }
  0x1c   : > { %128 = sbr.rel (%p125_p3) target bundleno = 77 (0x4d), region = 24  ;;  %s400_s12 = sshll.u32 (!%p125_p3), %s677_s5, 3 }
  0x1d   : > { %s131_s13 = scalar_lea.sflag (!%p125_p3), [#allocation3], %s677_s5  ;;  %s134_s15 = scalar_lea.vmem (!%p125_p3), [#allocation2], %s400_s12 }
  0x21   : > { %558 = dma.done.wait (%p650_p8), %s131_s13, 128  }
  0x22   : > { %560 = vsyncadd (%p650_p8), %s131_s13, 4294967168  ;;  %vm159_vm0 = vcmask 1041408   ;;  %v685_v0 = vld [vmem:[%s134_s15] sm:$0x3]  ;;  %v687_v1 = vld [vmem:[%s134_s15 + $0x2] sm:$0x3] }
  0x23   : > { %v689_v2 = vld [vmem:[%s134_s15 + $0x4] sm:$0x3]  ;;  %v691_v3 = vld [vmem:[%s134_s15 + $0x6] sm:$0x3]  ;;  %v158_v4 = vmul.f32 %v685_v0, %v685_v0  ;;  %v167_v5 = vmul.f32 %v687_v1, %v685_v0  ;;  %v191_v7 = vmul.f32 %v687_v1, %v687_v1  ;;  %vm267_vm1 = vcmask 1040384   ;;  %s401_s16 = sshll.u32 %s677_s5, 4 }
  0x24   : > { %v175_v6 = vmul.f32 %v689_v2, %v685_v0  ;;  %v183_v8 = vmul.f32 %v691_v3, %v685_v0  ;;  %v199_v9 = vmul.f32 %v689_v2, %v687_v1  ;;  %v207_v10 = vmul.f32 %v691_v3, %v687_v1  ;;  %s739_s17 = scalar_lea.vmem [#allocation5], %s401_s16  ;;  %s408_s18 = sshll.u32 %s579_s9, 4 }
  0x25   : > { %v215_v11 = vmul.f32 %v689_v2, %v689_v2  ;;  %v160_v12 = vsel %vm159_vm0, %v158_v4, 0.0  ;;  %v168_v13 = vsel %vm159_vm0, %v167_v5, 0.0  ;;  %v192_v15 = vsel %vm159_vm0, %v191_v7, 0.0  ;;  %s302_s24 = scalar_lea.hbm %s789_s1, %s408_s18  ;;  %s303_s25 = sshll.u32 %s739_s17, 4  ;;  %s304_s25 = int_to_ptr.vmem [resolvable:$true] %s303_s25 }
  0x26   : > { %v176_v14 = vsel %vm159_vm0, %v175_v6, 0.0  ;;  %v161_v16 = vrot.slane %v160_v12, 4  ;;  %v169_v17 = vrot.slane %v168_v13, 4  ;;  %v184_v19 = vsel %vm159_vm0, %v183_v8, 0.0  ;;  %s305_s9 = sshll.u32 %s302_s24, 4  ;;  %s289_s26 = scalar_lea.sflag [#allocation4], %s677_s5  ;;  %s306_s9 = int_to_ptr.hbm [resolvable:$true] %s305_s9 }
  0x27   : > { %v177_v18 = vrot.slane %v176_v14, 4  ;;  %v185_v20 = vrot.slane %v184_v19, 4  ;;  %v193_v21 = vrot.slane %v192_v15, 4  ;;  %v200_v22 = vsel %vm159_vm0, %v199_v9, 0.0  ;;  %s519_s27 = sshra.s32 %s306_s9, 4  ;;  %s525_s2 = scalar_lea.hbm %s789_s1, 32  ;;  %s520_s27 = int_to_ptr.hbm [resolvable:$true] %s519_s27 }
  0x28   : > { %v208_v23 = vsel %vm159_vm0, %v207_v10, 0.0  ;;  %v162_v24 = vadd.f32 %v161_v16, %v160_v12  ;;  %v170_v25 = vadd.f32 %v169_v17, %v168_v13  ;;  %v201_v27 = vrot.slane %v200_v22, 4  ;;  %s521_s28 = scalar_lea.hbm %s520_s27, 16  ;;  %p526_p7 = scmp.lt.s32.totalorder %s520_s27, %s789_s1 }
  0x29   : > { %v178_v26 = vadd.f32 %v177_v18, %v176_v14  ;;  %v186_v28 = vadd.f32 %v185_v20, %v184_v19  ;;  %v194_v29 = vadd.f32 %v193_v21, %v192_v15  ;;  %v209_v30 = vrot.slane %v208_v23, 4  ;;  %p522_p4 = scmp.ne.s32.totalorder %s520_s27, %s521_s28  ;;  %p527_p8 = scmp.lt.s32.totalorder %s525_s2, %s521_s28 }
  0x2a   : > { %v216_v31 = vsel %vm159_vm0, %v215_v11, 0.0  ;;  %vm270_vm2 = vcmask 1042432   ;;  %v163_v32 = vrot.slane %v162_v24, 2  ;;  %v171_v33 = vrot.slane %v170_v25, 2 }
  0x2b   : > { %v179_v34 = vrot.slane %v178_v26, 2  ;;  %v202_v35 = vadd.f32 %v201_v27, %v200_v22  ;;  %vm272_vm3 = vcmask 1043456   ;;  %v187_v36 = vrot.slane %v186_v28, 2  ;;  %p523_p5 = pnand %p522_p4, %p654_p9  ;;  %p528_p10 = por %p527_p8, %p526_p7 }
  0x2c   : > { %v195_v37 = vrot.slane %v194_v29, 2  ;;  %v210_v38 = vadd.f32 %v209_v30, %v208_v23  ;;  %v217_v39 = vrot.slane %v216_v31, 4  ;;  %vm274_vm4 = vcmask 1044480  }
  0x2d   : > { %v164_v40 = vadd.f32 %v163_v32, %v162_v24  ;;  %v172_v41 = vadd.f32 %v171_v33, %v170_v25  ;;  %v180_v42 = vadd.f32 %v179_v34, %v178_v26  ;;  %v203_v43 = vrot.slane %v202_v35, 2  ;;  %p524_p6 = pneg %p523_p5 }
  0x2e   : > { %vm276_vm5 = vcmask 1045504   ;;  %v188_v44 = vadd.f32 %v187_v36, %v186_v28  ;;  %v196_v45 = vadd.f32 %v195_v37, %v194_v29  ;;  %v211_v46 = vrot.slane %v210_v38, 2 }
  0x2f   : > { %v218_v47 = vadd.f32 %v217_v39, %v216_v31  ;;  %vm278_vm6 = vcmask 1046528   ;;  %v165_v48 = vrot.slane %v164_v40, 1  ;;  %v173_v49 = vrot.slane %v172_v41, 1  ;;  %p529_p13 = pnand %p528_p10, %p524_p6 }
  0x30   : > { %v181_v50 = vrot.slane %v180_v42, 1  ;;  %v204_v51 = vadd.f32 %v203_v43, %v202_v35  ;;  %v189_v52 = vrot.slane %v188_v44, 1  ;;  %v197_v53 = vrot.slane %v196_v45, 1 }
  0x31   : > { %v212_v54 = vadd.f32 %v211_v46, %v210_v38  ;;  %v219_v55 = vrot.slane %v218_v47, 2  ;;  %v166_v56 = vadd.f32 %v165_v48, %v164_v40  ;;  %v174_v57 = vadd.f32 %v173_v49, %v172_v41 }
  0x32   : > { %v182_v58 = vadd.f32 %v181_v50, %v180_v42  ;;  %v205_v59 = vrot.slane %v204_v51, 1  ;;  %v190_v60 = vadd.f32 %v189_v52, %v188_v44  ;;  %v198_v61 = vadd.f32 %v197_v53, %v196_v45 }
  0x33   : > { %v213_v62 = vrot.slane %v212_v54, 1  ;;  %v220_v63 = vadd.f32 %v219_v55, %v218_v47  ;;  %v268_v5 = vsel %vm267_vm1, %v166_v56, %v174_v57  ;;  %v223_v6 = vmul.f32 %v691_v3, %v689_v2 }
  0x34   : > { %v206_v4 = vadd.f32 %v205_v59, %v204_v51  ;;  %v231_v7 = vmul.f32 %v691_v3, %v691_v3  ;;  %v269_v10 = vsel %vm159_vm0, %v268_v5, %v182_v58  ;;  %v239_v11 = vsel %vm159_vm0, %v685_v0, 0.0 }
  0x35   : > { %v214_v8 = vadd.f32 %v213_v62, %v212_v54  ;;  %v221_v9 = vrot.slane %v220_v63, 1  ;;  %v271_v12 = vsel %vm270_vm2, %v269_v10, %v190_v60  ;;  %v224_v13 = vsel %vm159_vm0, %v223_v6, 0.0 }
  0x36   : > { %v232_v14 = vsel %vm159_vm0, %v231_v7, 0.0  ;;  %v240_v15 = vrot.slane %v239_v11, 4  ;;  %v273_v17 = vsel %vm272_vm3, %v271_v12, %v198_v61  ;;  %v225_v18 = vrot.slane %v224_v13, 4 }
  0x37   : > { %v222_v16 = vadd.f32 %v221_v9, %v220_v63  ;;  %v233_v19 = vrot.slane %v232_v14, 4  ;;  %v275_v20 = vsel %vm274_vm4, %v273_v17, %v206_v4  ;;  %v246_v22 = vsel %vm159_vm0, %v687_v1, 0.0 }
  0x38   : > { %v241_v21 = vadd.f32 %v240_v15, %v239_v11  ;;  %v253_v0 = vsel %vm159_vm0, %v689_v2, 0.0  ;;  %v277_v23 = vsel %vm276_vm5, %v275_v20, %v214_v8  ;;  %v226_v24 = vadd.f32 %v225_v18, %v224_v13 }
  0x39   : > { %v234_v25 = vadd.f32 %v233_v19, %v232_v14  ;;  %v247_v26 = vrot.slane %v246_v22, 4  ;;  %v279_v27 = vsel %vm278_vm6, %v277_v23, %v222_v16  ;;  %v254_v29 = vrot.slane %v253_v0, 4 }
  0x3a   : > { %v242_v28 = vrot.slane %v241_v21, 2  ;;  %v260_v30 = vsel %vm159_vm0, %v691_v3, 0.0  ;;  %286 = vst [vmem:[%s739_s17] sm:$0xff] %v279_v27  ;;  %v227_v1 = vrot.slane %v226_v24, 2 }
  0x3b   : > { %v235_v31 = vrot.slane %v234_v25, 2  ;;  %v248_v2 = vadd.f32 %v247_v26, %v246_v22  ;;  %v261_v32 = vrot.slane %v260_v30, 4  ;;  %v255_v34 = vadd.f32 %v254_v29, %v253_v0 }
  0x3c   : > { %v243_v33 = vadd.f32 %v242_v28, %v241_v21  ;;  %v228_v35 = vadd.f32 %v227_v1, %v226_v24 }
  0x3d   : > { %v236_v36 = vadd.f32 %v235_v31, %v234_v25  ;;  %v249_v37 = vrot.slane %v248_v2, 2  ;;  %v262_v38 = vadd.f32 %v261_v32, %v260_v30  ;;  %v256_v40 = vrot.slane %v255_v34, 2 }
  0x3e   : > { %v244_v39 = vrot.slane %v243_v33, 1  ;;  %v229_v41 = vrot.slane %v228_v35, 1 }
  0x3f   : > { %v237_v3 = vrot.slane %v236_v36, 1  ;;  %v250_v42 = vadd.f32 %v249_v37, %v248_v2  ;;  %v263_v43 = vrot.slane %v262_v38, 2  ;;  %v257_v45 = vadd.f32 %v256_v40, %v255_v34 }
  0x40   : > { %v245_v44 = vadd.f32 %v244_v39, %v243_v33  ;;  %v230_v46 = vadd.f32 %v229_v41, %v228_v35 }
  0x41   : > { %v238_v47 = vadd.f32 %v237_v3, %v236_v36  ;;  %v251_v48 = vrot.slane %v250_v42, 1  ;;  %v264_v49 = vadd.f32 %v263_v43, %v262_v38  ;;  %v258_v50 = vrot.slane %v257_v45, 1 }
  0x43   : > { %v252_v51 = vadd.f32 %v251_v48, %v250_v42  ;;  %v265_v52 = vrot.slane %v264_v49, 1  ;;  %v280_v53 = vsel %vm267_vm1, %v230_v46, %v238_v47  ;;  %v259_v54 = vadd.f32 %v258_v50, %v257_v45 }
  0x44   : > { %v281_v55 = vsel %vm159_vm0, %v280_v53, %v245_v44 }
  0x45   : > { %v266_v56 = vadd.f32 %v265_v52, %v264_v49  ;;  %v282_v57 = vsel %vm270_vm2, %v281_v55, %v252_v51 }
  0x46   : > { %v283_v58 = vsel %vm272_vm3, %v282_v57, %v259_v54 }
  0x47   : > { %v284_v59 = vsel %vm274_vm4, %v283_v58, %v266_v56 }
  0x48   : > { %v285_v60 = vsel %vm276_vm5, %v284_v59, 0.0 }
  0x49   : > { %287 = vst [vmem:[%s739_s17 + $0x8] sm:$0xff] %v285_v60 }
  0x4a   : > { %532 = shalt.err (!%p529_p13)
}
  0x4b   : > { %s591_s5 = smov 128   ;;  %s592_s12 = smov 8  }
  0x4c   : > { %411 = dma.vmem_to_hbm [thread:$0]  (%p654_p9), %s304_s25, 256, %s306_s9, %s289_s26, %s591_s5, %s591_s5, %s592_s12  }
  0x4d PF: > { %s320_s13 = sand.u32 1, %s567_s6   ;;  %p418_p0 = pnand %p395_p12, %p661_p11 }
  0x4e   : > { %s321_s15 = scalar_lea.sflag [#allocation4], %s320_s13 }
  0x4f   : > { %p419_p1 = pneg %p418_p0 }
  0x51   : > { %562 = dma.done.wait (%p419_p1), %s321_s15, 256  }
  0x52   : > { %564 = vsyncadd (%p419_p1), %s321_s15, 4294967040  ;;  %s17_s11 = sadd.s32 1, %s587_s11   ;;  %s794_s6 = smov %s571_s7 }
  0x53   : > { %p14_p2 = scmp.ge.s32.totalorder %s17_s11, 4   ;;  %s795_s7 = smov %s575_s8 }
  0x54   : > { %s796_s8 = smov %s659_s20  ;;  %s797_s9 = smov %s583_s10 }
  0x55   : > { %s798_s10 = smov %s800_s14  ;;  %16 = sbr.rel (!%p14_p2) target bundleno = 6 (0x6), region = 69 }
  0x5a   :  { %327 = vsyncpa [#allocation3], 1 }
  0x5b   :  { %329 = vsyncpa [#allocation3 + $0x1], 1 }
  0x5c   :  { %330 = vsyncpa [#allocation4], 1 }
  0x5d   :  { %332 = vsyncpa [#allocation4 + $0x1], 1 }

</bundles_post_ra>
